<compile_context>
chip_gen: v7x
topology: tpu7x:2x2x1
jax: 0.10.0
libtpu: 0.0.40
codegen_flags: <defaults>
</compile_context>

<pallas_src>
import functools
import math

import jax
import jax.numpy as jnp
from jax import lax
from jax.experimental import pallas as pl
from jax.experimental.pallas import tpu as pltpu
import numpy as np

_LANES = 128
_TARGET_ROWS = 2048                     # ~1 MiB f32 per output block
_MAX_PATTERN_BYTES = 2 * 1024 * 1024    # fallback threshold for huge periods
_SUBLANE_PACK = {1: 32, 2: 16, 4: 8}    # sublane packing per dtype itemsize


def _copy_pattern_kernel(pat_ref, o_ref):
    # Lane-dense block fill: the precomputed 1/0 class pattern tile is resident
    # in VMEM; each grid step streams it to the output block (pure vst work).
    o_ref[...] = pat_ref[...]


def _direct_fill_kernel(o_ref, *, num_classes):
    # Fallback layout (rows, num_classes+1): cast-of-compare, no materialized
    # ones/zeros constants and no select.
    col = lax.broadcasted_iota(jnp.int32, o_ref.shape, o_ref.ndim - 1)
    o_ref[...] = (col < num_classes).astype(o_ref.dtype)


def _lcm(a, b):
    return a * b // math.gcd(a, b)


def pseudo_class_embed(x, num_classes):
    """Pallas equivalent of PseudoClassEmbed.forward(x)."""
    lead_shape = x.shape[:-1]
    out_cols = num_classes + 1
    rows = int(np.prod(lead_shape)) if lead_shape else 1
    total = rows * out_cols

    if total == 0:
        # Degenerate (some leading dim is 0): no pallas_call needed.
        return jnp.zeros((*lead_shape, out_cols), dtype=x.dtype)

    itemsize = jnp.dtype(x.dtype).itemsize
    sublane = _SUBLANE_PACK.get(itemsize, 8)

    # --- Path A: lane-dense flat slab (preferred) -------------------------
    # Pattern period in slab rows: block element count must be a multiple of
    # out_cols (so the tile is block-position independent) and block rows a
    # multiple of the sublane packing (so tiled blocks satisfy (8,128) rules).
    unit = _lcm(out_cols // math.gcd(out_cols, _LANES), sublane)
    unit_bytes = unit * _LANES * itemsize

    if unit_bytes <= _MAX_PATTERN_BYTES:
        slab_rows = pl.cdiv(total, _LANES)
        if slab_rows <= max(_TARGET_ROWS, unit):
            block_rows = slab_rows            # single block == full array dims
            grid_rows = 1
        else:
            block_rows = unit * max(1, _TARGET_ROWS // unit)
            grid_rows = pl.cdiv(slab_rows, block_rows)
        padded_rows = grid_rows * block_rows

        # Build the pattern tile once, outside the kernel.
        flat_idx = jnp.arange(block_rows * _LANES, dtype=jnp.int32)
        pattern = ((flat_idx % out_cols) < num_classes).astype(x.dtype)
        pattern = pattern.reshape(block_rows, _LANES)

        flat_out = pl.pallas_call(
            _copy_pattern_kernel,
            out_shape=jax.ShapeDtypeStruct((padded_rows, _LANES), x.dtype),
            grid=(grid_rows,),
            in_specs=[pl.BlockSpec((block_rows, _LANES), lambda i: (0, 0))],
            out_specs=pl.BlockSpec((block_rows, _LANES), lambda i: (i, 0)),
            compiler_params=pltpu.CompilerParams(
                dimension_semantics=("parallel",)),
        )(pattern)

        return flat_out.reshape(-1)[:total].reshape(*lead_shape, out_cols)

    # --- Path B: fallback, (rows, out_cols) layout, row-tiled -------------
    if rows <= _TARGET_ROWS:
        tr, grid_r = rows, 1                  # single block == full array dims
    else:
        tr = sublane * max(1, _TARGET_ROWS // sublane)
        grid_r = pl.cdiv(rows, tr)
    padded_r = grid_r * tr

    flat_out = pl.pallas_call(
        functools.partial(_direct_fill_kernel, num_classes=num_classes),
        out_shape=jax.ShapeDtypeStruct((padded_r, out_cols), x.dtype),
        grid=(grid_r,),
        out_specs=pl.BlockSpec((tr, out_cols), lambda i: (i, 0)),
        compiler_params=pltpu.CompilerParams(
            dimension_semantics=("parallel",)),
    )()

    return flat_out[:rows].reshape(*lead_shape, out_cols)


def _reference(x, num_classes):
    # Plain-JAX mirror of the PyTorch forward.
    return jnp.concatenate(
        [jnp.ones((*x.shape[:-1], num_classes), dtype=x.dtype),
         jnp.zeros((*x.shape[:-1], 1), dtype=x.dtype)],
        axis=-1)


if __name__ == "__main__":
    key = jax.random.PRNGKey(0)
    num_classes = 10

    # Small case matching ODISE usage: (batch, num_queries, hidden).
    x1 = jax.random.normal(key, (2, 8, 32), dtype=jnp.float32)
    out1 = jax.block_until_ready(pseudo_class_embed(x1, num_classes))
    assert out1.shape == (2, 8, num_classes + 1), out1.shape
    assert out1.dtype == x1.dtype, out1.dtype
    np.testing.assert_array_equal(np.asarray(out1),
                                  np.asarray(_reference(x1, num_classes)))

    # bf16 small case (exercises dtype-dependent sublane packing).
    x2 = jax.random.normal(key, (3, 7, 16), dtype=jnp.bfloat16)
    out2 = jax.block_until_ready(pseudo_class_embed(x2, num_classes))
    assert out2.shape == (3, 7, num_classes + 1), out2.shape
    assert out2.dtype == jnp.bfloat16, out2.dtype
    np.testing.assert_array_equal(
        np.asarray(out2.astype(jnp.float32)),
        np.asarray(_reference(x2, num_classes).astype(jnp.float32)))

    # Moderately larger case to exercise the multi-block row-tiled grid path.
    x3 = jax.random.normal(key, (2, 16384, 8), dtype=jnp.float32)
    out3 = jax.block_until_ready(pseudo_class_embed(x3, num_classes))
    assert out3.shape == (2, 16384, num_classes + 1), out3.shape
    np.testing.assert_array_equal(np.asarray(out3),
                                  np.asarray(_reference(x3, num_classes)))

    print("KERNEL_OK")
</pallas_src>

<mosaic_0001>
module attributes {stable_mosaic.version = 11 : i64} {
  func.func @_copy_pattern_kernel(%arg0: i32, %arg1: memref<2x128xf32, #tpu.memory_space<vmem>>, %arg2: memref<2x128xf32, #tpu.memory_space<vmem>>) attributes {dimension_semantics = [#tpu.dimension_semantics<parallel>], iteration_bounds = array<i64: 1>, scalar_prefetch = 0 : i64, scratch_operands = 0 : i64, tpu.core_type = #tpu.core_type<tc>, window_params = [{pipeline_mode = #tpu.pipeline_mode<synchronous>, transform_indices = @transform_0, window_bounds = array<i64: 2, 128>}, {transform_indices = @transform_1, window_bounds = array<i64: 2, 128>}]} {
    %c0 = arith.constant 0 : index
    %c0_0 = arith.constant 0 : index
    %0 = vector.load %arg1[%c0, %c0_0] : memref<2x128xf32, #tpu.memory_space<vmem>>, vector<2x128xf32>
    %c0_1 = arith.constant 0 : index
    %c0_2 = arith.constant 0 : index
    %1 = vector.load %arg2[%c0_1, %c0_2] : memref<2x128xf32, #tpu.memory_space<vmem>>, vector<2x128xf32>
    tpu.vector_store %arg2[%c0_1, %c0_2], %0 {strides = array<i32>} : memref<2x128xf32, #tpu.memory_space<vmem>>, vector<2x128xf32>,
    return
  }
  func.func @transform_0(%arg0: i32) -> (i32, i32) {
    %c0_i32 = arith.constant 0 : i32
    %c0_i32_0 = arith.constant 0 : i32
    %c0_i32_1 = arith.constant 0 : i32
    return %c0_i32, %c0_i32_0 : i32, i32
  }
  func.func @transform_1(%arg0: i32) -> (i32, i32) {
    %c0_i32 = arith.constant 0 : i32
    %c0_i32_0 = arith.constant 0 : i32
    return %arg0, %c0_i32 : i32, i32
  }
}

</mosaic_0001>

<bundles_post_ra>
// kernel: tpu_custom_call.1
= control target key start
LH: loop header
LB: loop body
LE: loop exit
PB: predicated region body
PF: predicated region fallthrough
CT: control target
= control target key end

     0   :  { %6 = vsyncpa [#allocation3], 0  ;;  %s124_s0 = inlined_call_operand.hbm [shape: f32[2,128], index: 0, kind: input, shape index: {}]   ;;  %s125_s1 = inlined_call_operand.hbm [shape: f32[2,128], index: 1, kind: output, shape index: {}]  }
   0x1   :  { %7 = vsyncpa [#allocation4], 0  ;;  %s88_s6 = smov [#allocation2]   ;;  %s40_s10 = scalar_lea.hbm %s124_s0, 32 }
   0x2   :  { %s14_s7 = sshll.u32 %s88_s6, 4  ;;  %p41_p0 = scmp.ne.s32.totalorder %s124_s0, %s40_s10  ;;  %s15_s7 = int_to_ptr.vmem [resolvable:$true] %s14_s7 }
   0x3   :  { %p44_p1 = scmp.lt.u32.totalorder %s40_s10, %s124_s0 }
   0x5   :  { %p46_p2 = pnand %p44_p1, %p41_p0 }
   0x7   :  { %49 = shalt.err (!%p46_p2)
}
   0x8   :  { %s50_s15 = scalar_lea.vmem %s15_s7, 32  ;;  %p55_p4 = scmp.lt.s32.totalorder %s15_s7, %s15_s7 }
   0x9   :  { %p51_p3 = scmp.ne.s32.totalorder %s15_s7, %s50_s15  ;;  %p56_p5 = scmp.lt.s32.totalorder %s50_s15, %s50_s15 }
   0xb   :  { %p57_p6 = por %p56_p5, %p55_p4 }
   0xd   :  { %p58_p7 = pnand %p57_p6, %p51_p3 }
   0xf   :  { %61 = shalt.err (!%p58_p7)
}
  0x10   :  { %17 = dma.hbm_to_vmem [thread:$0]  %s124_s0, 32, %s15_s7, [#allocation3]  }
  0x11   :  { %84 = dma.done.wait [#allocation3], 32  }
  0x12   :  { %85 = vsyncadd [#allocation3], 4294967264  ;;  %s89_s18 = smov [#allocation5]   ;;  %v21_v0 = vld [vmem:[#allocation2] sm:$0x3] }
  0x13   :  { %s29_s19 = sshll.u32 %s89_s18, 4  ;;  %22 = vst [vmem:[#allocation5] sm:$0x3] %v21_v0  ;;  %s30_s19 = int_to_ptr.vmem [resolvable:$true] %s29_s19 }
  0x14   :  { %s62_s20 = scalar_lea.vmem %s30_s19, 32  ;;  %p67_p9 = scmp.lt.s32.totalorder %s30_s19, %s30_s19 }
  0x15   :  { %p63_p8 = scmp.ne.s32.totalorder %s30_s19, %s62_s20  ;;  %p68_p10 = scmp.lt.s32.totalorder %s62_s20, %s62_s20 }
  0x17   :  { %p69_p11 = por %p68_p10, %p67_p9 }
  0x19   :  { %p70_p12 = pnand %p69_p11, %p63_p8 }
  0x1b   :  { %73 = shalt.err (!%p70_p12)
}
  0x1c   :  { %s74_s23 = scalar_lea.hbm %s125_s1, 32 }
  0x1d   :  { %p75_p13 = scmp.ne.s32.totalorder %s125_s1, %s74_s23  ;;  %p78_p0 = scmp.lt.u32.totalorder %s74_s23, %s125_s1 }
  0x1f   :  { %p80_p1 = pnand %p78_p0, %p75_p13 }
  0x21   :  { %83 = shalt.err (!%p80_p1)
}
  0x22   :  { %32 = dma.vmem_to_hbm [thread:$0]  %s30_s19, 32, %s125_s1, [#allocation4]  }
  0x23   :  { %86 = dma.done.wait [#allocation4], 32  }
  0x24   :  { %87 = vsyncadd [#allocation4], 4294967264 }
  0x25   :  { %36 = vsyncpa [#allocation3], 1 }
  0x26   :  { %37 = vsyncpa [#allocation4], 1 }

</bundles_post_ra>
